<compile_context>
chip_gen: v5e
topology: v5e:2x2
jax: 0.10.0
libtpu: 0.0.40
codegen_flags: <defaults>
</compile_context>

<pallas_src>
import functools

import jax
import jax.numpy as jnp
import numpy as np
from jax import lax
from jax.experimental import pallas as pl
from jax.experimental.pallas import tpu as pltpu

_NEG_BIG = -1.0e9  # bias for padded softmax lanes -> exp() underflows to 0


# ----------------------------------------------------------------------------
# Host-side helpers (static).
# ----------------------------------------------------------------------------
def _round_up(x, m):
    return ((x + m - 1) // m) * m


@functools.lru_cache(maxsize=None)
def _vmem_capacity_bytes():
    """Physical VMEM per TensorCore; conservative 64 MiB fallback (v7x)."""
    try:
        cap = int(pltpu.get_tpu_info().vmem_capacity_bytes)
        if cap > 0:
            return cap
    except Exception:
        pass
    return 64 * 1024 * 1024


def _vmem_limit(vmem_cap):
    return int(min(0.9 * vmem_cap, 127 * 1024 * 1024))


@functools.lru_cache(maxsize=None)
def _num_tensorcores():
    """TensorCores per device: 2 on v7x / megacore parts, 1 on v5e/v6e."""
    try:
        dev = jax.devices()[0]
        n = getattr(dev, "num_cores", None)
        if isinstance(n, int) and n > 0:
            return n
        kind = str(getattr(dev, "device_kind", "")).lower()
        if "lite" in kind:
            return 1
        for tag in ("v7", "v5p", "v4"):
            if tag in kind:
                return 2
    except Exception:
        pass
    return 1


_SB_OK = None  # memo: does this JAX accept pipeline_mode=pl.Buffered(1)?


def _sb_probe_kernel(a_ref, o_ref):
    o_ref[...] = a_ref[...]


def _single_buffer_supported():
    """Probe once whether single-buffering grid-invariant blocks works."""
    global _SB_OK
    if _SB_OK is None:
        try:
            x = jnp.zeros((8, 128), jnp.float32)
            f = pl.pallas_call(
                _sb_probe_kernel,
                out_shape=jax.ShapeDtypeStruct((8, 128), jnp.float32),
                grid_spec=pltpu.PrefetchScalarGridSpec(
                    num_scalar_prefetch=0,
                    grid=(2,),
                    in_specs=[pl.BlockSpec((8, 128), lambda i: (0, 0),
                                           pipeline_mode=pl.Buffered(1))],
                    out_specs=pl.BlockSpec((8, 128), lambda i: (0, 0))),
            )
            jax.block_until_ready(f(x))
            _SB_OK = True
        except Exception:
            _SB_OK = False
    return _SB_OK


def _const_spec(shape, index_map):
    """BlockSpec for a grid-invariant operand; single-buffered if supported."""
    if _single_buffer_supported():
        return pl.BlockSpec(shape, index_map, pipeline_mode=pl.Buffered(1))
    return pl.BlockSpec(shape, index_map)


def _pick_chunk(T, Bt, G, Hp, budget_bytes, itemsize):
    """Timesteps per grid step, bounded by VMEM (double-buffered preact + y)."""
    per_t = (itemsize * Bt * G + 4 * Bt * Hp) * 2
    cap = max(1, budget_bytes // max(per_t, 1))
    cap = int(min(cap, T, 64))
    c = max(cap, 1)
    while T % c:
        c -= 1
    return max(c, 1)


def _pick_row_block(rows, Bp, D, G, budget_bytes, itemsize=4):
    """Row tile for the projection GEMM: multiple of Bp dividing rows, VMEM-bounded."""
    per_row = itemsize * (D + G) * 2          # x tile + out tile, double-buffered
    cap = max(Bp, budget_bytes // max(per_row, 1))
    cap = min(cap, rows, 2048)
    t_steps = rows // Bp
    best = Bp
    for cand in range(1, t_steps + 1):
        if t_steps % cand == 0 and Bp * cand <= cap:
            best = Bp * cand
    return best


def _level_matrices(H, L, Hp, Lp):
    """M_i, M_f (padded): fold softmax->cumsum->repeat_interleave into matmuls.

    i_h = (exp_i @ M_i) / sum(exp_i)   (reverse cumsum then repeat)
    f_h = (exp_f @ M_f) / sum(exp_f)   (forward cumsum then repeat)
    """
    n_rep = H // L
    k = np.arange(L)[:, None]
    j = np.arange(L)[None, :]
    cum_fwd = (k <= j).astype(np.float32)
    cum_rev = (k >= j).astype(np.float32)
    expand = (np.arange(H)[None, :] // n_rep == np.arange(L)[:, None]).astype(np.float32)
    mi = np.zeros((Lp, Hp), np.float32)
    mf = np.zeros((Lp, Hp), np.float32)
    mi[:L, :H] = cum_rev @ expand
    mf[:L, :H] = cum_fwd @ expand
    return jnp.asarray(mi), jnp.asarray(mf)


# ----------------------------------------------------------------------------
# Kernel 1: time-parallel input projection  (T*Bp, D) @ (D, G) + bias
# ----------------------------------------------------------------------------
def _proj_kernel(x_ref, w_ref, b_ref, o_ref, *, matmul_dtype):
    acc = jnp.dot(x_ref[...].astype(matmul_dtype), w_ref[...],
                  preferred_element_type=jnp.float32)
    o_ref[...] = (acc + b_ref[...]).astype(o_ref.dtype)


def _input_projection(x_tbd, wx, bc, *, vmem_cap, out_dtype, matmul_dtype):
    """x_tbd: (T, Bp, D) time-major.  Returns preact (T, Bp, G)."""
    T, Bp, D = x_tbd.shape
    G = wx.shape[1]
    rows = T * Bp
    x2 = x_tbd.reshape(rows, D)
    budget = max(int(0.4 * vmem_cap) - 2 * (D * G + G) * 4, Bp * (D + G) * 8)
    RM = _pick_row_block(rows, Bp, D, G, budget)

    kernel = functools.partial(_proj_kernel, matmul_dtype=matmul_dtype)
    out = pl.pallas_call(
        kernel,
        out_shape=jax.ShapeDtypeStruct((rows, G), out_dtype),
        grid_spec=pltpu.PrefetchScalarGridSpec(
            num_scalar_prefetch=0,
            grid=(rows // RM,),
            in_specs=[
                pl.BlockSpec((RM, D), lambda r: (r, 0)),
                _const_spec((D, G), lambda r: (0, 0)),
                _const_spec((1, G), lambda r: (0, 0)),
            ],
            out_specs=pl.BlockSpec((RM, G), lambda r: (r, 0))),
        compiler_params=pltpu.CompilerParams(
            dimension_semantics=("parallel",),
            vmem_limit_bytes=_vmem_limit(vmem_cap)),
    )(x2, wx, bc)
    return out.reshape(T, Bp, G)


# ----------------------------------------------------------------------------
# Kernel 2: the recurrence.  Grid = (batch_shards, time_chunks).
# ----------------------------------------------------------------------------
def _onlstm_recurrent_kernel(pre_ref, wh_ref, mi_ref, mf_ref, h0_ref, c0_ref,
                             y_ref, hT_ref, cT_ref,
                             h_sc, c_sc,
                             *, hidden_pad, level_pad, chunk, matmul_dtype):
    Hp = hidden_pad
    Lp = level_pad
    C = chunk
    t = pl.program_id(1)

    @pl.when(t == 0)
    def _():
        h_sc[...] = h0_ref[...]
        c_sc[...] = c0_ref[...]

    def sigmoid(z):
        # exact identity sigmoid(z) = 0.5*(1 + tanh(z/2)): EUP tanh, no overflow.
        return 0.5 * (jnp.tanh(0.5 * z) + 1.0)

    wh = wh_ref[...]      # (Hp, G)   resident across the chunk
    mi = mi_ref[...]      # (Lp, Hp)
    mf = mf_ref[...]      # (Lp, Hp)

    def step(s, carry):
        h_prev, c_prev = carry
        # single fused recurrent matmul: lstm gates + level logits together.
        z = pre_ref[s].astype(jnp.float32) + jnp.dot(
            h_prev.astype(matmul_dtype), wh, preferred_element_type=jnp.float32)
        # all slabs start on 128-lane boundaries -> free views, no shuffles.
        i = sigmoid(z[:, 0 * Hp:1 * Hp])
        f = sigmoid(z[:, 1 * Hp:2 * Hp])
        o = sigmoid(z[:, 2 * Hp:3 * Hp])
        g = jnp.tanh(z[:, 3 * Hp:4 * Hp])
        zi = z[:, 4 * Hp:4 * Hp + Lp]
        zf = z[:, 4 * Hp + Lp:4 * Hp + 2 * Lp]
        # unnormalized softmax; padded lanes carry a -1e9 bias -> exp == 0.
        ei = jnp.exp(zi - jnp.max(zi, axis=-1, keepdims=True))
        ef = jnp.exp(zf - jnp.max(zf, axis=-1, keepdims=True))
        inv_i = pl.reciprocal(jnp.sum(ei, axis=-1, keepdims=True), approx=True)
        inv_f = pl.reciprocal(jnp.sum(ef, axis=-1, keepdims=True), approx=True)
        # structural matmuls fold cumsum + repeat_interleave; normalization is
        # deferred to a single multiply over the Hp lanes (no concat needed).
        i_h = jnp.dot(ei.astype(matmul_dtype), mi,
                      preferred_element_type=jnp.float32) * inv_i
        f_h = jnp.dot(ef.astype(matmul_dtype), mf,
                      preferred_element_type=jnp.float32) * inv_f
        w = i_h * f_h
        c_new = w * (f * c_prev + i * g) + (f_h - w) * c_prev + (i_h - w) * g
        h_new = o * jnp.tanh(c_new)
        y_ref[s] = h_new.astype(y_ref.dtype)      # Hp is lane-dense -> unmasked vst
        return h_new, c_new

    # cap the unroll at 8 to keep vreg pressure manageable (v5e: 1 vst slot).
    h_last, c_last = lax.fori_loop(0, C, step, (h_sc[...], c_sc[...]),
                                   unroll=min(C, 8))

    # carry state across time chunks (one scratch store per chunk, not per step)
    h_sc[...] = h_last
    c_sc[...] = c_last

    @pl.when(t == pl.num_programs(1) - 1)
    def _():
        hT_ref[...] = h_last.astype(hT_ref.dtype)
        cT_ref[...] = c_last.astype(cT_ref.dtype)


def _run_recurrence(preact, wh, mi, mf, h0, c0, *, hidden_pad, level_pad,
                    nb, vmem_cap, matmul_dtype):
    """preact: (T, Bp, G) time-major.  Returns y (T,Bp,Hp), h_T (Bp,Hp), c_T."""
    T, Bp, G = preact.shape
    Hp, Lp = hidden_pad, level_pad
    Bt = Bp // nb
    itemsize = jnp.dtype(preact.dtype).itemsize

    const_bytes = ((wh.size + mi.size + mf.size) * jnp.dtype(wh.dtype).itemsize
                   + 6 * Bt * Hp * 4)
    budget = max(int(0.5 * vmem_cap) - 2 * const_bytes,
                 2 * Bt * (G + Hp) * itemsize)
    C = _pick_chunk(T, Bt, G, Hp, budget, itemsize)
    nt = T // C

    kernel = functools.partial(_onlstm_recurrent_kernel,
                               hidden_pad=Hp, level_pad=Lp, chunk=C,
                               matmul_dtype=matmul_dtype)

    y, hT, cT = pl.pallas_call(
        kernel,
        out_shape=(jax.ShapeDtypeStruct((T, Bp, Hp), jnp.float32),
                   jax.ShapeDtypeStruct((Bp, Hp), jnp.float32),
                   jax.ShapeDtypeStruct((Bp, Hp), jnp.float32)),
        grid_spec=pltpu.PrefetchScalarGridSpec(
            num_scalar_prefetch=0,
            grid=(nb, nt),
            in_specs=[
                pl.BlockSpec((C, Bt, G), lambda b, t: (t, b, 0)),     # preact
                _const_spec((Hp, G), lambda b, t: (0, 0)),            # wh
                _const_spec((Lp, Hp), lambda b, t: (0, 0)),           # M_i
                _const_spec((Lp, Hp), lambda b, t: (0, 0)),           # M_f
                pl.BlockSpec((Bt, Hp), lambda b, t: (b, 0)),          # h0
                pl.BlockSpec((Bt, Hp), lambda b, t: (b, 0)),          # c0
            ],
            out_specs=[
                pl.BlockSpec((C, Bt, Hp), lambda b, t: (t, b, 0)),    # y
                pl.BlockSpec((Bt, Hp), lambda b, t: (b, 0)),          # hT
                pl.BlockSpec((Bt, Hp), lambda b, t: (b, 0)),          # cT
            ],
            scratch_shapes=[pltpu.VMEM((Bt, Hp), jnp.float32),
                            pltpu.VMEM((Bt, Hp), jnp.float32)]),
        compiler_params=pltpu.CompilerParams(
            dimension_semantics=("parallel", "arbitrary"),
            vmem_limit_bytes=_vmem_limit(vmem_cap)),
    )(preact, wh, mi, mf, h0, c0)
    return y, hT, cT


# ----------------------------------------------------------------------------
# OnLSTM module equivalent (wrapper = padding/glue; heavy lifting = Pallas).
# ----------------------------------------------------------------------------
class OnLSTMPallas:
    def __init__(self, input_size, hidden_size, level_hidden_size=None,
                 num_layers=1, bias=True, batch_first=True,
                 bidirectional=False, key=jax.random.PRNGKey(0),
                 matmul_dtype=jnp.float32, preact_dtype=jnp.float32):
        assert num_layers >= 1
        if level_hidden_size is None:
            level_hidden_size = hidden_size
        else:
            assert hidden_size % level_hidden_size == 0
        self.input_size = input_size
        self.hidden_size = hidden_size
        self.level_hidden_size = level_hidden_size
        self.num_layers = num_layers
        self.bias = bias
        self.batch_first = batch_first
        self.bidirectional = bidirectional
        # set matmul_dtype=jnp.bfloat16 on v6e/v7x for native MXU rate.
        self.matmul_dtype = matmul_dtype
        self.preact_dtype = preact_dtype

        H, L = hidden_size, level_hidden_size
        self.hidden_pad = _round_up(H, 128)     # lane-dense gate slabs / y stores
        self.level_pad = _round_up(L, 128)
        Hp, Lp = self.hidden_pad, self.level_pad
        self.gate_width = 4 * Hp + 2 * Lp

        self.vmem_cap = _vmem_capacity_bytes()
        self.n_cores = _num_tensorcores()

        mi, mf = _level_matrices(H, L, Hp, Lp)
        self.mi = mi.astype(matmul_dtype)
        self.mf = mf.astype(matmul_dtype)

        self.params = []
        for layer in range(num_layers):
            d_in = input_size if layer == 0 else H
            d_in_p = input_size if layer == 0 else Hp
            fan_in = d_in + H
            bound = 1.0 / np.sqrt(fan_in)
            key, k1, k2, k3, k4 = jax.random.split(key, 5)
            wl = jax.random.uniform(k1, (fan_in, 4 * H), jnp.float32, -bound, bound)
            wv = jax.random.uniform(k2, (fan_in, 2 * L), jnp.float32, -bound, bound)
            if bias:
                bl = jax.random.uniform(k3, (1, 4 * H), jnp.float32, -bound, bound)
                bv = jax.random.uniform(k4, (1, 2 * L), jnp.float32, -bound, bound)
            else:
                bl = jnp.zeros((1, 4 * H), jnp.float32)
                bv = jnp.zeros((1, 2 * L), jnp.float32)

            # ---- build the lane-padded fused weight/bias layout --------------
            wl_np, wv_np = np.asarray(wl), np.asarray(wv)
            bl_np, bv_np = np.asarray(bl), np.asarray(bv)
            G = self.gate_width
            wcomb = np.zeros((d_in_p + Hp, G), np.float32)
            bcomb = np.zeros((1, G), np.float32)
            bcomb[:, 4 * Hp:] = _NEG_BIG          # padded level lanes -> exp == 0
            for gidx in range(4):                 # i, f, o, g slabs
                wcomb[:d_in, gidx * Hp:gidx * Hp + H] = wl_np[:d_in, gidx * H:(gidx + 1) * H]
                wcomb[d_in_p:d_in_p + H, gidx * Hp:gidx * Hp + H] = wl_np[d_in:, gidx * H:(gidx + 1) * H]
                bcomb[:, gidx * Hp:gidx * Hp + H] = bl_np[:, gidx * H:(gidx + 1) * H]
            for sidx, col0 in enumerate((4 * Hp, 4 * Hp + Lp)):   # p_i, p_f slabs
                wcomb[:d_in, col0:col0 + L] = wv_np[:d_in, sidx * L:(sidx + 1) * L]
                wcomb[d_in_p:d_in_p + H, col0:col0 + L] = wv_np[d_in:, sidx * L:(sidx + 1) * L]
                bcomb[:, col0:col0 + L] = bv_np[:, sidx * L:(sidx + 1) * L]

            self.params.append({
                "wl": wl, "bl": bl, "wv": wv, "bv": bv,            # unpadded (reference)
                "wx": jnp.asarray(wcomb[:d_in_p]).astype(matmul_dtype),  # (D_in_p, G)
                "wh": jnp.asarray(wcomb[d_in_p:]).astype(matmul_dtype),  # (Hp, G)
                "bc": jnp.asarray(bcomb),                                 # (1, G) f32
            })

    # TODO(synk): optionally fuse all layers into a single pallas_call (layer
    # activations kept in VMEM) once per-chip VMEM residency is budgeted.
    def _forward_impl(self, x_btd, h0, c0):
        """x_btd: (B, T, D).  h0/c0: (num_layers, B, H)."""
        B, T, _ = x_btd.shape
        H, Hp = self.hidden_size, self.hidden_pad
        # batch-shard grid axis only when there genuinely are 2 TensorCores
        # and the batch is big enough to keep each shard (8, .)-aligned & useful.
        nb = 2 if (self.n_cores >= 2 and B >= 16) else 1
        Bp = _round_up(B, 8 * nb)

        x_tbd = jnp.transpose(x_btd, (1, 0, 2))          # time-major
        if Bp != B:
            x_tbd = jnp.pad(x_tbd, ((0, 0), (0, Bp - B), (0, 0)))
        h0p = jnp.pad(h0.astype(jnp.float32), ((0, 0), (0, Bp - B), (0, Hp - H)))
        c0p = jnp.pad(c0.astype(jnp.float32), ((0, 0), (0, Bp - B), (0, Hp - H)))

        cur = x_tbd
        h_hold, c_hold = [], []
        for layer in range(self.num_layers):
            p = self.params[layer]
            preact = _input_projection(cur, p["wx"], p["bc"],
                                       vmem_cap=self.vmem_cap,
                                       out_dtype=self.preact_dtype,
                                       matmul_dtype=self.matmul_dtype)
            y, hT, cT = _run_recurrence(preact, p["wh"], self.mi, self.mf,
                                        h0p[layer], c0p[layer],
                                        hidden_pad=Hp,
                                        level_pad=self.level_pad,
                                        nb=nb, vmem_cap=self.vmem_cap,
                                        matmul_dtype=self.matmul_dtype)
            cur = y                                       # (T, Bp, Hp)
            h_hold.append(hT)
            c_hold.append(cT)

        layer_output = jnp.transpose(cur, (1, 0, 2))[:B, :, :H]   # strip padding
        h_n = jnp.stack(h_hold, 0)[:, :B, :H]
        c_n = jnp.stack(c_hold, 0)[:, :B, :H]
        return layer_output, (h_n, c_n)

    def __call__(self, x, hx=None):
        if not self.batch_first:
            x = jnp.transpose(x, (1, 0, 2))
        num_dir = 2 if self.bidirectional else 1
        B = x.shape[0]
        if hx is None:
            zeros = jnp.zeros((self.num_layers * num_dir, B, self.hidden_size),
                              dtype=x.dtype)
            hx = (zeros, zeros)
        h, c = hx
        if num_dir == 2:
            h_f, h_b = h[:self.num_layers], h[self.num_layers:]
            c_f, c_b = c[:self.num_layers], c[self.num_layers:]
            out_f, (hf, cf) = self._forward_impl(x, h_f, c_f)
            out_b, (hb, cb) = self._forward_impl(jnp.flip(x, axis=1), h_b, c_b)
            out_b = jnp.flip(out_b, axis=1)
            layer_output = jnp.concatenate([out_f, out_b], axis=-1)
            h = jnp.stack([hf, hb], axis=1).reshape(-1, B, self.hidden_size)
            c = jnp.stack([cf, cb], axis=1).reshape(-1, B, self.hidden_size)
            hx = (h, c)
        else:
            layer_output, hx = self._forward_impl(x, h, c)
        if not self.batch_first:
            layer_output = jnp.transpose(layer_output, (1, 0, 2))
        return layer_output, hx


# ----------------------------------------------------------------------------
# Pure-JAX reference (mirrors the PyTorch code) for a correctness check.
# ----------------------------------------------------------------------------
def _ref_cell(x, h_prev, c_prev, p, H, L):
    n_rep = H // L
    combined = jnp.concatenate([x, h_prev], axis=-1)
    gates = combined @ p["wl"] + p["bl"]
    lvl = combined @ p["wv"] + p["bv"]
    cc_i, cc_f, cc_o, cc_g = jnp.split(gates, 4, axis=1)
    cc_i_h, cc_f_h = jnp.split(lvl, 2, axis=1)
    i = jax.nn.sigmoid(cc_i)
    f = jax.nn.sigmoid(cc_f)
    o = jax.nn.sigmoid(cc_o)
    g = jnp.tanh(cc_g)
    p_f = jax.nn.softmax(cc_f_h, axis=-1)
    p_i = jax.nn.softmax(cc_i_h, axis=-1)
    f_h = jnp.cumsum(p_f, axis=-1)
    i_h = jnp.flip(jnp.cumsum(jnp.flip(p_i, -1), axis=-1), -1)
    i_h = jnp.repeat(i_h, n_rep, axis=-1)
    f_h = jnp.repeat(f_h, n_rep, axis=-1)
    w = i_h * f_h
    c_new = w * (f * c_prev + i * g) + (f_h - w) * c_prev + (i_h - w) * g
    h_new = o * jnp.tanh(c_new)
    return h_new, c_new


def _ref_onlstm(model, x):
    B, T, _ = x.shape
    H, L = model.hidden_size, model.level_hidden_size
    cur = x
    h_hold, c_hold = [], []
    for layer in range(model.num_layers):
        h_t = jnp.zeros((B, H), jnp.float32)
        c_t = jnp.zeros((B, H), jnp.float32)
        outs = []
        for t in range(T):
            h_t, c_t = _ref_cell(cur[:, t], h_t, c_t, model.params[layer], H, L)
            outs.append(h_t)
        cur = jnp.stack(outs, axis=1)
        h_hold.append(h_t)
        c_hold.append(c_t)
    return cur, (jnp.stack(h_hold, 0), jnp.stack(c_hold, 0))


if __name__ == "__main__":
    B, T, D = 2, 8, 16
    H, L = 32, 8
    num_layers = 2

    key = jax.random.PRNGKey(0)
    k_x, k_p = jax.random.split(key)
    x = jax.random.normal(k_x, (B, T, D), dtype=jnp.float32)

    model = OnLSTMPallas(input_size=D, hidden_size=H, level_hidden_size=L,
                         num_layers=num_layers, bias=True, batch_first=True,
                         bidirectional=False, key=k_p)

    y, (h_n, c_n) = model(x)
    y = jax.block_until_ready(y)
    h_n = jax.block_until_ready(h_n)
    c_n = jax.block_until_ready(c_n)

    y_ref, (h_ref, c_ref) = _ref_onlstm(model, x)
    assert y.shape == (B, T, H) and h_n.shape == (num_layers, B, H)
    # tolerance loosened only for pl.reciprocal(approx=True) in the softmax
    # normalization; matmuls stay f32 in this demo configuration.
    np.testing.assert_allclose(np.asarray(y), np.asarray(y_ref), rtol=1e-2, atol=2e-3)
    np.testing.assert_allclose(np.asarray(h_n), np.asarray(h_ref), rtol=1e-2, atol=2e-3)
    np.testing.assert_allclose(np.asarray(c_n), np.asarray(c_ref), rtol=1e-2, atol=2e-3)

    print("KERNEL_OK")
</pallas_src>

<mosaic_0001>
module attributes {stable_mosaic.version = 11 : i64} {
  func.func @_sb_probe_kernel(%arg0: i32, %arg1: memref<8x128xf32, #tpu.memory_space<vmem>>, %arg2: memref<8x128xf32, #tpu.memory_space<vmem>>) attributes {dimension_semantics = [#tpu.dimension_semantics<arbitrary>], iteration_bounds = array<i64: 2>, scalar_prefetch = 0 : i64, scratch_operands = 0 : i64, tpu.core_type = #tpu.core_type<tc>, window_params = [{pipeline_mode = #tpu.pipeline_mode<synchronous>, transform_indices = @transform_0, window_bounds = array<i64: 8, 128>}, {pipeline_mode = #tpu.pipeline_mode<synchronous>, transform_indices = @transform_1, window_bounds = array<i64: 8, 128>}]} {
    %c0 = arith.constant 0 : index
    %c0_0 = arith.constant 0 : index
    %0 = vector.load %arg1[%c0, %c0_0] : memref<8x128xf32, #tpu.memory_space<vmem>>, vector<8x128xf32>
    %c0_1 = arith.constant 0 : index
    %c0_2 = arith.constant 0 : index
    %1 = vector.load %arg2[%c0_1, %c0_2] : memref<8x128xf32, #tpu.memory_space<vmem>>, vector<8x128xf32>
    tpu.vector_store %arg2[%c0_1, %c0_2], %0 {strides = array<i32>} : memref<8x128xf32, #tpu.memory_space<vmem>>, vector<8x128xf32>,
    return
  }
  func.func @transform_0(%arg0: i32) -> (i32, i32) {
    %c0_i32 = arith.constant 0 : i32
    %c0_i32_0 = arith.constant 0 : i32
    %c0_i32_1 = arith.constant 0 : i32
    return %c0_i32, %c0_i32_0 : i32, i32
  }
  func.func @transform_1(%arg0: i32) -> (i32, i32) {
    %c0_i32 = arith.constant 0 : i32
    %c0_i32_0 = arith.constant 0 : i32
    %c0_i32_1 = arith.constant 0 : i32
    return %c0_i32, %c0_i32_0 : i32, i32
  }
}

module attributes {stable_mosaic.version = 11 : i64} {
  func.func @_proj_kernel(%arg0: i32, %arg1: memref<64x16xf32, #tpu.memory_space<vmem>>, %arg2: memref<16x768xf32, #tpu.memory_space<vmem>>, %arg3: memref<1x768xf32, #tpu.memory_space<vmem>>, %arg4: memref<64x768xf32, #tpu.memory_space<vmem>>) attributes {dimension_semantics = [#tpu.dimension_semantics<parallel>], iteration_bounds = array<i64: 1>, scalar_prefetch = 0 : i64, scratch_operands = 0 : i64, tpu.core_type = #tpu.core_type<tc>, window_params = [{transform_indices = @transform_0, window_bounds = array<i64: 64, 16>}, {pipeline_mode = #tpu.pipeline_mode<synchronous>, transform_indices = @transform_1, window_bounds = array<i64: 16, 768>}, {pipeline_mode = #tpu.pipeline_mode<synchronous>, transform_indices = @transform_2, window_bounds = array<i64: 1, 768>}, {transform_indices = @transform_3, window_bounds = array<i64: 64, 768>}]} {
    %c0 = arith.constant 0 : index
    %c0_0 = arith.constant 0 : index
    %0 = vector.load %arg1[%c0, %c0_0] : memref<64x16xf32, #tpu.memory_space<vmem>>, vector<64x16xf32>
    %c0_1 = arith.constant 0 : index
    %c0_2 = arith.constant 0 : index
    %1 = vector.load %arg2[%c0_1, %c0_2] : memref<16x768xf32, #tpu.memory_space<vmem>>, vector<16x768xf32>
    %cst = arith.constant dense<0.000000e+00> : vector<64x768xf32>
    %2 = tpu.matmul %0, %1, %cst {dimension_numbers = #tpu.dot_dimension_numbers<[1], [0], [0], [1], [0, 0, 1, 1], [], []>} : vector<64x16xf32>, vector<16x768xf32>, vector<64x768xf32> -> vector<64x768xf32>
    %c0_3 = arith.constant 0 : index
    %c0_4 = arith.constant 0 : index
    %3 = vector.load %arg3[%c0_3, %c0_4] : memref<1x768xf32, #tpu.memory_space<vmem>>, vector<1x768xf32>
    %4 = vector.broadcast %3 : vector<1x768xf32> to vector<64x768xf32>
    %5 = arith.addf %2, %4 : vector<64x768xf32>
    %c0_5 = arith.constant 0 : index
    %c0_6 = arith.constant 0 : index
    %6 = vector.load %arg4[%c0_5, %c0_6] : memref<64x768xf32, #tpu.memory_space<vmem>>, vector<64x768xf32>
    tpu.vector_store %arg4[%c0_5, %c0_6], %5 {strides = array<i32>} : memref<64x768xf32, #tpu.memory_space<vmem>>, vector<64x768xf32>,
    return
  }
  func.func @transform_0(%arg0: i32) -> (i32, i32) {
    %c0_i32 = arith.constant 0 : i32
    %c0_i32_0 = arith.constant 0 : i32
    return %arg0, %c0_i32 : i32, i32
  }
  func.func @transform_1(%arg0: i32) -> (i32, i32) {
    %c0_i32 = arith.constant 0 : i32
    %c0_i32_0 = arith.constant 0 : i32
    %c0_i32_1 = arith.constant 0 : i32
    return %c0_i32, %c0_i32_0 : i32, i32
  }
  func.func @transform_2(%arg0: i32) -> (i32, i32) {
    %c0_i32 = arith.constant 0 : i32
    %c0_i32_0 = arith.constant 0 : i32
    %c0_i32_1 = arith.constant 0 : i32
    return %c0_i32, %c0_i32_0 : i32, i32
  }
  func.func @transform_3(%arg0: i32) -> (i32, i32) {
    %c0_i32 = arith.constant 0 : i32
    %c0_i32_0 = arith.constant 0 : i32
    return %arg0, %c0_i32 : i32, i32
  }
}

</mosaic_0001>

<bundles_post_ra>
// kernel: tpu_custom_call.1
= control target key start
LH: loop header
LB: loop body
LE: loop exit
PB: predicated region body
PF: predicated region fallthrough
CT: control target
= control target key end

     0   :  { %6 = vsyncpa [#allocation3], 0  ;;  %s286_s0 = inlined_call_operand.hbm [shape: f32[8,128], index: 0, kind: input, shape index: {}]   ;;  %s287_s1 = inlined_call_operand.hbm [shape: f32[8,128], index: 1, kind: output, shape index: {}]  }
   0x1   :  { %7 = vsyncpa [#allocation4], 0  ;;  %s269_s6 = smov 0  }
   0x2 LB: > { %s148_s7 = sadd.s32 4294967295, %s255_s6   ;;  %p149_p0 = scmp.ge.s32.totalorder %s255_s6, 1  ;;  %s255_s6 = sphi %s269_s6, %s13_s6  }
   0x3   : > { %p60_p1 = scmp.lt.s32.totalorder %s255_s6, 3  ;;  %s72_s10 = sshll.u32 %s286_s0, 4  ;;  %s73_s10 = int_to_ptr.hbm [resolvable:$true] %s72_s10 }
   0x4   : > { %p169_p3 = scmp.eq.s32.totalorder %s148_s7, 0  ;;  %s257_s11 = smov [#allocation2]  }
   0x5   : > { %p61_p2 = pnand %p149_p0, %p60_p1  ;;  %s74_s12 = sshll.u32 %s257_s11, 4  ;;  %s75_s12 = int_to_ptr.vmem [resolvable:$true] %s74_s12 }
   0x7   : > { %p165_p4 = pneg %p61_p2  ;;  %87 = sbr.rel (%p61_p2) target bundleno = 19 (0x13), region = 24 }
   0x9   : > { %p166_p5 = pnand %p169_p3, %p165_p4 }
   0xb   : > { %168 = dma.hbm_to_vmem [thread:$0]  (!%p166_p5), %s73_s10, 128, %s75_s12, [#allocation3]  }
   0xc   : > { %246 = dma.done.wait (%p169_p3), [#allocation3], 128  }
   0xd   : > { %248 = vsyncadd (%p169_p3), [#allocation3], 4294967168  ;;  %s258_s13 = smov [#allocation5]   ;;  %s108_s17 = sshll.u32 %s287_s1, 4  ;;  %v98_v0 = vld [vmem:[#allocation2] sm:$0xff]  ;;  %s109_s17 = int_to_ptr.hbm [resolvable:$true] %s108_s17 }
   0xe   : > { %s106_s14 = sshll.u32 %s258_s13, 4  ;;  %p171_p6 = scmp.eq.s32.totalorder %s148_s7, 1  ;;  %99 = vst [vmem:[#allocation5] sm:$0xff] %v98_v0  ;;  %s107_s14 = int_to_ptr.vmem [resolvable:$true] %s106_s14 }
  0x10   : > { %162 = dma.vmem_to_hbm [thread:$0]  (%p171_p6), %s107_s14, 128, %s109_s17, [#allocation4]  }
  0x11   : > { %250 = dma.done.wait (%p171_p6), [#allocation4], 128  }
  0x12   : > { %252 = vsyncadd (%p171_p6), [#allocation4], 4294967168 }
  0x13 PF: > { %s13_s6 = sadd.s32 1, %s255_s6  }
  0x14   : > { %p10_p7 = scmp.ge.s32.totalorder %s13_s6, 4  }
  0x16   :  { %12 = sbr.rel (!%p10_p7) target bundleno = 2 (0x2), region = 53 }
  0x1b   :  { %122 = vsyncpa [#allocation3], 1 }
  0x1c   :  { %124 = vsyncpa [#allocation3 + $0x1], 1 }
  0x1d   :  { %125 = vsyncpa [#allocation4], 1 }
  0x1e   :  { %127 = vsyncpa [#allocation4 + $0x1], 1 }

// kernel: tpu_custom_call.1
= control target key start
LH: loop header
LB: loop body
LE: loop exit
PB: predicated region body
PF: predicated region fallthrough
CT: control target
= control target key end

     0   :  { %8 = vsyncpa [#allocation3], 0  ;;  %s670_s0 = inlined_call_operand.vmem [shape: f32[64,16], index: 0, kind: input, shape index: {}]   ;;  %s671_s1 = inlined_call_operand.hbm [shape: f32[16,768], index: 1, kind: input, shape index: {}]   ;;  %s672_s2 = inlined_call_operand.vmem [shape: f32[1,768], index: 2, kind: input, shape index: {}]   ;;  %s673_s3 = inlined_call_operand.hbm [shape: f32[64,768], index: 3, kind: output, shape index: {}]  }
   0x1   :  { %9 = vsyncpa [#allocation4], 0  ;;  %s16_s14 = sshll.u32 %s671_s1, 4  ;;  %s511_s15 = smov [#allocation2]   ;;  %s17_s14 = int_to_ptr.hbm [resolvable:$true] %s16_s14 }
   0x2   :  { %s18_s16 = sshll.u32 %s511_s15, 4  ;;  %s512_s17 = smov 768   ;;  %s19_s16 = int_to_ptr.vmem [resolvable:$true] %s18_s16 }
   0x3   :  { %s513_s18 = smov 48  }
   0x4   :  { %24 = dma.hbm_to_vmem [thread:$0]  %s17_s14, 1536, %s19_s16, [#allocation3], %s512_s17, %s512_s17, %s513_s18  }
   0x5   :  { %507 = dma.done.wait [#allocation3], 1536  }
   0x6   :  { %508 = vsyncadd [#allocation3], 4294965760  ;;  %v45_v0 = vld [vmem:[#allocation2 + $0x30] sm:$0xff]  ;;  %v46_v1 = vld [vmem:[#allocation2 + $0x38] sm:$0xff]  ;;  %vm65_vm0 = vcmask 130048   ;;  %s390_s11 = sshll.u32 %s673_s3, 4  ;;  %s391_s11 = int_to_ptr.hbm [resolvable:$true] %s390_s11 }
   0x7   :  { %v39_v2 = vld [vmem:[#allocation2] sm:$0xff]  ;;  %451 = vmatpush.msra.mxu2 %v45_v0  ;;  %453 = vmatpush.msra.mxu3 %v46_v1  ;;  %v40_v3 = vld [vmem:[#allocation2 + $0x8] sm:$0xff]  ;;  %v49_v8 = vld [vmem:[#allocation2 + $0x50] sm:$0xff] }
   0x8   :  { %v544_v4 = vld [vmem:[%s670_s0 + $0x20] sm:$0xff]  ;;  %v48_v6 = vld [vmem:[#allocation2 + $0x48] sm:$0xff]  ;;  %104 = vmatpush.msra.mxu0 %v45_v0  ;;  %145 = vmatpush.msra.mxu1 %v46_v1  ;;  %v50_v9 = vld [vmem:[#allocation2 + $0x58] sm:$0xff] }
   0x9   :  { %v47_v5 = vld [vmem:[#allocation2 + $0x40] sm:$0xff]  ;;  %452 = vmatpush.msra.mxu2 %v39_v2  ;;  %454 = vmatpush.msra.mxu3 %v40_v3  ;;  %v41_v10 = vld [vmem:[#allocation2 + $0x10] sm:$0xff]  ;;  %v42_v11 = vld [vmem:[#allocation2 + $0x18] sm:$0xff] }
   0xa   :  { %407 = vmatmul.msk.f32.vlgmr.msra.gmra.mxu2 %vm65_vm0, %v544_v4  ;;  %415 = vmatmul.msk.f32.vlgmr.msra.gmra.mxu3 %vm65_vm0, %v544_v4  ;;  %v31_v7 = vld [vmem:[%s670_s0] sm:$0xff]  ;;  %v44_v13 = vld [vmem:[#allocation2 + $0x28] sm:$0xff]  ;;  %v37_v16 = vld [vmem:[%s670_s0 + $0x30] sm:$0xff] }
   0xb   :  { %186 = vmatpush.msrb.mxu2 %v47_v5  ;;  %227 = vmatpush.msrb.mxu3 %v48_v6  ;;  %v43_v12 = vld [vmem:[#allocation2 + $0x20] sm:$0xff]  ;;  %v36_v14 = vld [vmem:[%s670_s0 + $0x28] sm:$0xff]  ;;  %v33_v17 = vld [vmem:[%s670_s0 + $0x10] sm:$0xff] }
   0xc   :  { %105 = vmatpush.msra.mxu0 %v39_v2  ;;  %146 = vmatpush.msra.mxu1 %v40_v3  ;;  %v32_v15 = vld [vmem:[%s670_s0 + $0x8] sm:$0xff]  ;;  %v38_v18 = vld [vmem:[%s670_s0 + $0x38] sm:$0xff]  ;;  %v51_v20 = vld [vmem:[%s672_s2] sm:$0x3f]  ;;  %s514_s2 = smov [#allocation5]  }
   0xd   :  { %403 = vmatmul.msk.f32.vlgmr.msra.gmra.mxu0 %vm65_vm0, %v31_v7  ;;  %411 = vmatmul.msk.f32.vlgmr.msra.gmra.mxu1 %vm65_vm0, %v31_v7  ;;  %v34_v19 = vld [vmem:[%s670_s0 + $0x18] sm:$0xff]  ;;  %v53_v21 = vperm.slane %v51_v20, 0  ;;  %v54_v22 = vperm.slane %v51_v20, 1  ;;  %v624_v55 = vperm.slane %v51_v20, 4  ;;  %v626_v56 = vperm.slane %v51_v20, 5  ;;  %s388_s8 = sshll.u32 %s514_s2, 4  ;;  %s389_s8 = int_to_ptr.vmem [resolvable:$true] %s388_s8 }
   0xe   :  { %268 = vmatpush.msrb.mxu0 %v49_v8  ;;  %309 = vmatpush.msrb.mxu1 %v50_v9  ;;  %v628_v57 = vperm.slane %v51_v20, 2  ;;  %v630_v58 = vperm.slane %v51_v20, 3 }
   0xf   :  { %187 = vmatpush.msrb.mxu2 %v41_v10  ;;  %228 = vmatpush.msrb.mxu3 %v42_v11 }
  0x10   :  { %269 = vmatpush.msrb.mxu0 %v43_v12  ;;  %310 = vmatpush.msrb.mxu1 %v44_v13 }
  0x12   :  { %408 = vmatmul.msk.f32.gmra.mxu2 %vm65_vm0, %v36_v14  ;;  %416 = vmatmul.msk.f32.gmra.mxu3 %vm65_vm0, %v36_v14 }
  0x15   :  { %404 = vmatmul.msk.f32.gmra.mxu0 %vm65_vm0, %v32_v15  ;;  %412 = vmatmul.msk.f32.gmra.mxu1 %vm65_vm0, %v32_v15 }
  0x1a   :  { %409 = vmatmul.msk.f32.gmra.mxu2 %vm65_vm0, %v37_v16  ;;  %417 = vmatmul.msk.f32.gmra.mxu3 %vm65_vm0, %v37_v16 }
  0x1d   :  { %405 = vmatmul.msk.f32.gmra.mxu0 %vm65_vm0, %v33_v17  ;;  %413 = vmatmul.msk.f32.gmra.mxu1 %vm65_vm0, %v33_v17 }
  0x22   :  { %410 = vmatmul.msk.f32.gmra.mxu2 %vm65_vm0, %v38_v18  ;;  %418 = vmatmul.msk.f32.gmra.mxu3 %vm65_vm0, %v38_v18 }
  0x25   :  { %406 = vmatmul.msk.f32.gmra.mxu0 %vm65_vm0, %v34_v19  ;;  %414 = vmatmul.msk.f32.gmra.mxu1 %vm65_vm0, %v34_v19 }
  0x2a   :  { %419 = vmatmul.msk.f32.vlgmr.msrb.gmra.mxu2 %vm65_vm0, %v31_v7  ;;  %427 = vmatmul.msk.f32.vlgmr.msrb.gmra.mxu3 %vm65_vm0, %v31_v7 }
  0x2d   :  { %435 = vmatmul.msk.f32.vlgmr.msrb.gmra.mxu0 %vm65_vm0, %v31_v7  ;;  %443 = vmatmul.msk.f32.vlgmr.msrb.gmra.mxu1 %vm65_vm0, %v31_v7 }
  0x32   :  { %420 = vmatmul.msk.f32.gmra.mxu2 %vm65_vm0, %v32_v15  ;;  %428 = vmatmul.msk.f32.gmra.mxu3 %vm65_vm0, %v32_v15 }
  0x35   :  { %436 = vmatmul.msk.f32.gmra.mxu0 %vm65_vm0, %v32_v15  ;;  %444 = vmatmul.msk.f32.gmra.mxu1 %vm65_vm0, %v32_v15 }
  0x3a   :  { %421 = vmatmul.msk.f32.gmra.mxu2 %vm65_vm0, %v33_v17  ;;  %429 = vmatmul.msk.f32.gmra.mxu3 %vm65_vm0, %v33_v17 }
  0x3d   :  { %437 = vmatmul.msk.f32.gmra.mxu0 %vm65_vm0, %v33_v17  ;;  %445 = vmatmul.msk.f32.gmra.mxu1 %vm65_vm0, %v33_v17 }
  0x42   :  { %422 = vmatmul.msk.f32.gmra.mxu2 %vm65_vm0, %v34_v19  ;;  %430 = vmatmul.msk.f32.gmra.mxu3 %vm65_vm0, %v34_v19 }
  0x45   :  { %438 = vmatmul.msk.f32.gmra.mxu0 %vm65_vm0, %v34_v19  ;;  %446 = vmatmul.msk.f32.gmra.mxu1 %vm65_vm0, %v34_v19 }
  0x4a   :  { %423 = vmatmul.msk.f32.gmra.mxu2 %vm65_vm0, %v544_v4  ;;  %431 = vmatmul.msk.f32.gmra.mxu3 %vm65_vm0, %v544_v4 }
  0x4d   :  { %439 = vmatmul.msk.f32.gmra.mxu0 %vm65_vm0, %v544_v4  ;;  %447 = vmatmul.msk.f32.gmra.mxu1 %vm65_vm0, %v544_v4 }
  0x52   :  { %424 = vmatmul.msk.f32.gmra.mxu2 %vm65_vm0, %v36_v14  ;;  %432 = vmatmul.msk.f32.gmra.mxu3 %vm65_vm0, %v36_v14 }
  0x55   :  { %440 = vmatmul.msk.f32.gmra.mxu0 %vm65_vm0, %v36_v14  ;;  %448 = vmatmul.msk.f32.gmra.mxu1 %vm65_vm0, %v36_v14 }
  0x5a   :  { %425 = vmatmul.msk.f32.gmra.mxu2 %vm65_vm0, %v37_v16  ;;  %433 = vmatmul.msk.f32.gmra.mxu3 %vm65_vm0, %v37_v16 }
  0x5d   :  { %441 = vmatmul.msk.f32.gmra.mxu0 %vm65_vm0, %v37_v16  ;;  %449 = vmatmul.msk.f32.gmra.mxu1 %vm65_vm0, %v37_v16 }
  0x62   :  { %426 = vmatmul.msk.f32.gmra.mxu2 %vm65_vm0, %v38_v18  ;;  %434 = vmatmul.msk.f32.gmra.mxu3 %vm65_vm0, %v38_v18 }
  0x65   :  { %442 = vmatmul.msk.f32.gmra.mxu0 %vm65_vm0, %v38_v18  ;;  %450 = vmatmul.msk.f32.gmra.mxu1 %vm65_vm0, %v38_v18 }
  0x8a   :  { %v107_v23 = vpop.f32.mrf.mxu0  ;;  %v148_v24 = vpop.f32.mrf.mxu1 }
  0x8b   :  { %v108_v25 = vadd.f32 %v107_v23, %v53_v21  ;;  %v149_v26 = vadd.f32 %v148_v24, %v54_v22 }
  0x8d   :  { %336 = vst [vmem:[#allocation5] sm:$0xff] %v108_v25  ;;  %v119_v27 = vpop.f32.mrf.mxu2  ;;  %v160_v28 = vpop.f32.mrf.mxu3 }
  0x8e   :  { %v120_v29 = vadd.f32 %v119_v27, %v53_v21  ;;  %337 = vst [vmem:[#allocation5 + $0x8] sm:$0xff] %v149_v26  ;;  %v161_v30 = vadd.f32 %v160_v28, %v54_v22 }
  0x90   :  { %360 = vst [vmem:[#allocation5 + $0xc0] sm:$0xff] %v120_v29 }
  0x91   :  { %361 = vst [vmem:[#allocation5 + $0xc8] sm:$0xff] %v161_v30 }
  0x92   :  { %v110_v31 = vpop.f32.mrf.mxu0  ;;  %v151_v32 = vpop.f32.mrf.mxu1 }
  0x93   :  { %v111_v33 = vadd.f32 %v110_v31, %v53_v21  ;;  %v152_v34 = vadd.f32 %v151_v32, %v54_v22 }
  0x95   :  { %342 = vst [vmem:[#allocation5 + $0x30] sm:$0xff] %v111_v33  ;;  %v122_v35 = vpop.f32.mrf.mxu2  ;;  %v163_v36 = vpop.f32.mrf.mxu3 }
  0x96   :  { %v123_v37 = vadd.f32 %v122_v35, %v53_v21  ;;  %343 = vst [vmem:[#allocation5 + $0x38] sm:$0xff] %v152_v34  ;;  %v164_v38 = vadd.f32 %v163_v36, %v54_v22 }
  0x98   :  { %366 = vst [vmem:[#allocation5 + $0xf0] sm:$0xff] %v123_v37 }
  0x99   :  { %367 = vst [vmem:[#allocation5 + $0xf8] sm:$0xff] %v164_v38 }
  0x9a   :  { %v113_v39 = vpop.f32.mrf.mxu0  ;;  %v154_v40 = vpop.f32.mrf.mxu1 }
  0x9b   :  { %v114_v41 = vadd.f32 %v113_v39, %v53_v21  ;;  %v155_v42 = vadd.f32 %v154_v40, %v54_v22 }
  0x9d   :  { %348 = vst [vmem:[#allocation5 + $0x60] sm:$0xff] %v114_v41  ;;  %v125_v43 = vpop.f32.mrf.mxu2  ;;  %v166_v44 = vpop.f32.mrf.mxu3 }
  0x9e   :  { %v126_v45 = vadd.f32 %v125_v43, %v53_v21  ;;  %349 = vst [vmem:[#allocation5 + $0x68] sm:$0xff] %v155_v42  ;;  %v167_v46 = vadd.f32 %v166_v44, %v54_v22 }
  0xa0   :  { %372 = vst [vmem:[#allocation5 + $0x120] sm:$0xff] %v126_v45 }
  0xa1   :  { %373 = vst [vmem:[#allocation5 + $0x128] sm:$0xff] %v167_v46 }
  0xa2   :  { %v116_v47 = vpop.f32.mrf.mxu0  ;;  %v157_v48 = vpop.f32.mrf.mxu1 }
  0xa3   :  { %v117_v49 = vadd.f32 %v116_v47, %v53_v21  ;;  %v158_v50 = vadd.f32 %v157_v48, %v54_v22 }
  0xa5   :  { %354 = vst [vmem:[#allocation5 + $0x90] sm:$0xff] %v117_v49  ;;  %v128_v51 = vpop.f32.mrf.mxu2  ;;  %v169_v52 = vpop.f32.mrf.mxu3 }
  0xa6   :  { %v129_v53 = vadd.f32 %v128_v51, %v53_v21  ;;  %355 = vst [vmem:[#allocation5 + $0x98] sm:$0xff] %v158_v50  ;;  %v170_v54 = vadd.f32 %v169_v52, %v54_v22 }
  0xa8   :  { %378 = vst [vmem:[#allocation5 + $0x150] sm:$0xff] %v129_v53 }
  0xa9   :  { %379 = vst [vmem:[#allocation5 + $0x158] sm:$0xff] %v170_v54 }
  0xaa   :  { %v271_v59 = vpop.f32.mrf.mxu0  ;;  %v312_v60 = vpop.f32.mrf.mxu1 }
  0xab   :  { %v272_v61 = vadd.f32 %v271_v59, %v624_v55  ;;  %v313_v62 = vadd.f32 %v312_v60, %v626_v56 }
  0xad   :  { %v189_v63 = vpop.f32.mrf.mxu2  ;;  %v230_v0 = vpop.f32.mrf.mxu3  ;;  %340 = vst [vmem:[#allocation5 + $0x20] sm:$0xff] %v272_v61 }
  0xae   :  { %v190_v1 = vadd.f32 %v189_v63, %v628_v57  ;;  %v231_v2 = vadd.f32 %v230_v0, %v630_v58  ;;  %341 = vst [vmem:[#allocation5 + $0x28] sm:$0xff] %v313_v62 }
  0xb0   :  { %338 = vst [vmem:[#allocation5 + $0x10] sm:$0xff] %v190_v1 }
  0xb1   :  { %339 = vst [vmem:[#allocation5 + $0x18] sm:$0xff] %v231_v2 }
  0xb2   :  { %v274_v3 = vpop.f32.mrf.mxu0  ;;  %v315_v4 = vpop.f32.mrf.mxu1 }
  0xb3   :  { %v275_v5 = vadd.f32 %v274_v3, %v624_v55  ;;  %v316_v6 = vadd.f32 %v315_v4, %v626_v56 }
  0xb5   :  { %v192_v7 = vpop.f32.mrf.mxu2  ;;  %v233_v8 = vpop.f32.mrf.mxu3  ;;  %346 = vst [vmem:[#allocation5 + $0x50] sm:$0xff] %v275_v5 }
  0xb6   :  { %v193_v9 = vadd.f32 %v192_v7, %v628_v57  ;;  %v234_v10 = vadd.f32 %v233_v8, %v630_v58  ;;  %347 = vst [vmem:[#allocation5 + $0x58] sm:$0xff] %v316_v6 }
  0xb8   :  { %344 = vst [vmem:[#allocation5 + $0x40] sm:$0xff] %v193_v9 }
  0xb9   :  { %345 = vst [vmem:[#allocation5 + $0x48] sm:$0xff] %v234_v10 }
  0xba   :  { %v277_v11 = vpop.f32.mrf.mxu0  ;;  %v318_v12 = vpop.f32.mrf.mxu1 }
  0xbb   :  { %v278_v13 = vadd.f32 %v277_v11, %v624_v55  ;;  %v319_v14 = vadd.f32 %v318_v12, %v626_v56 }
  0xbd   :  { %v195_v15 = vpop.f32.mrf.mxu2  ;;  %v236_v16 = vpop.f32.mrf.mxu3  ;;  %352 = vst [vmem:[#allocation5 + $0x80] sm:$0xff] %v278_v13 }
  0xbe   :  { %v196_v17 = vadd.f32 %v195_v15, %v628_v57  ;;  %v237_v18 = vadd.f32 %v236_v16, %v630_v58  ;;  %353 = vst [vmem:[#allocation5 + $0x88] sm:$0xff] %v319_v14 }
  0xc0   :  { %350 = vst [vmem:[#allocation5 + $0x70] sm:$0xff] %v196_v17 }
  0xc1   :  { %351 = vst [vmem:[#allocation5 + $0x78] sm:$0xff] %v237_v18 }
  0xc2   :  { %v280_v19 = vpop.f32.mrf.mxu0  ;;  %v321_v20 = vpop.f32.mrf.mxu1 }
  0xc3   :  { %v281_v21 = vadd.f32 %v280_v19, %v624_v55  ;;  %v322_v22 = vadd.f32 %v321_v20, %v626_v56 }
  0xc5   :  { %v198_v23 = vpop.f32.mrf.mxu2  ;;  %v239_v24 = vpop.f32.mrf.mxu3  ;;  %358 = vst [vmem:[#allocation5 + $0xb0] sm:$0xff] %v281_v21 }
  0xc6   :  { %v199_v25 = vadd.f32 %v198_v23, %v628_v57  ;;  %v240_v26 = vadd.f32 %v239_v24, %v630_v58  ;;  %359 = vst [vmem:[#allocation5 + $0xb8] sm:$0xff] %v322_v22 }
  0xc8   :  { %356 = vst [vmem:[#allocation5 + $0xa0] sm:$0xff] %v199_v25 }
  0xc9   :  { %357 = vst [vmem:[#allocation5 + $0xa8] sm:$0xff] %v240_v26 }
  0xca   :  { %v283_v27 = vpop.f32.mrf.mxu0  ;;  %v324_v28 = vpop.f32.mrf.mxu1 }
  0xcb   :  { %v284_v29 = vadd.f32 %v283_v27, %v624_v55  ;;  %v325_v30 = vadd.f32 %v324_v28, %v626_v56 }
  0xcd   :  { %v201_v31 = vpop.f32.mrf.mxu2  ;;  %v242_v32 = vpop.f32.mrf.mxu3  ;;  %364 = vst [vmem:[#allocation5 + $0xe0] sm:$0xff] %v284_v29 }
  0xce   :  { %v202_v33 = vadd.f32 %v201_v31, %v628_v57  ;;  %v243_v34 = vadd.f32 %v242_v32, %v630_v58  ;;  %365 = vst [vmem:[#allocation5 + $0xe8] sm:$0xff] %v325_v30 }
  0xd0   :  { %362 = vst [vmem:[#allocation5 + $0xd0] sm:$0xff] %v202_v33 }
  0xd1   :  { %363 = vst [vmem:[#allocation5 + $0xd8] sm:$0xff] %v243_v34 }
  0xd2   :  { %v286_v35 = vpop.f32.mrf.mxu0  ;;  %v327_v36 = vpop.f32.mrf.mxu1 }
  0xd3   :  { %v287_v37 = vadd.f32 %v286_v35, %v624_v55  ;;  %v328_v38 = vadd.f32 %v327_v36, %v626_v56 }
  0xd5   :  { %v204_v39 = vpop.f32.mrf.mxu2  ;;  %v245_v40 = vpop.f32.mrf.mxu3  ;;  %370 = vst [vmem:[#allocation5 + $0x110] sm:$0xff] %v287_v37 }
  0xd6   :  { %v205_v41 = vadd.f32 %v204_v39, %v628_v57  ;;  %v246_v42 = vadd.f32 %v245_v40, %v630_v58  ;;  %371 = vst [vmem:[#allocation5 + $0x118] sm:$0xff] %v328_v38 }
  0xd8   :  { %368 = vst [vmem:[#allocation5 + $0x100] sm:$0xff] %v205_v41 }
  0xd9   :  { %369 = vst [vmem:[#allocation5 + $0x108] sm:$0xff] %v246_v42 }
  0xda   :  { %v289_v43 = vpop.f32.mrf.mxu0  ;;  %v330_v44 = vpop.f32.mrf.mxu1 }
  0xdb   :  { %v290_v45 = vadd.f32 %v289_v43, %v624_v55  ;;  %v331_v46 = vadd.f32 %v330_v44, %v626_v56 }
  0xdd   :  { %v207_v47 = vpop.f32.mrf.mxu2  ;;  %v248_v48 = vpop.f32.mrf.mxu3  ;;  %376 = vst [vmem:[#allocation5 + $0x140] sm:$0xff] %v290_v45 }
  0xde   :  { %v208_v49 = vadd.f32 %v207_v47, %v628_v57  ;;  %v249_v50 = vadd.f32 %v248_v48, %v630_v58  ;;  %377 = vst [vmem:[#allocation5 + $0x148] sm:$0xff] %v331_v46 }
  0xe0   :  { %374 = vst [vmem:[#allocation5 + $0x130] sm:$0xff] %v208_v49 }
  0xe1   :  { %375 = vst [vmem:[#allocation5 + $0x138] sm:$0xff] %v249_v50 }
  0xe2   :  { %v292_v51 = vpop.f32.mrf.mxu0  ;;  %v333_v52 = vpop.f32.mrf.mxu1 }
  0xe3   :  { %v293_v53 = vadd.f32 %v292_v51, %v624_v55  ;;  %v334_v54 = vadd.f32 %v333_v52, %v626_v56 }
  0xe5   :  { %v210_v59 = vpop.f32.mrf.mxu2  ;;  %v251_v60 = vpop.f32.mrf.mxu3  ;;  %382 = vst [vmem:[#allocation5 + $0x170] sm:$0xff] %v293_v53 }
  0xe6   :  { %v211_v61 = vadd.f32 %v210_v59, %v628_v57  ;;  %v252_v62 = vadd.f32 %v251_v60, %v630_v58  ;;  %383 = vst [vmem:[#allocation5 + $0x178] sm:$0xff] %v334_v54 }
  0xe8   :  { %380 = vst [vmem:[#allocation5 + $0x160] sm:$0xff] %v211_v61 }
  0xe9   :  { %381 = vst [vmem:[#allocation5 + $0x168] sm:$0xff] %v252_v62 }
  0xea   :  { %396 = dma.vmem_to_hbm [thread:$0]  %s389_s8, 6144, %s391_s11, [#allocation4], %s512_s17, %s512_s17, %s513_s18  }
  0xeb   :  { %509 = dma.done.wait [#allocation4], 6144  }
  0xec   :  { %510 = vsyncadd [#allocation4], 4294961152 }
  0xed   :  { %401 = vsyncpa [#allocation3], 1 }
  0xee   :  { %402 = vsyncpa [#allocation4], 1 }

</bundles_post_ra>
